<compile_context>
chip_gen: v7x
topology: tpu7x:2x2x1
jax: 0.10.0
libtpu: 0.0.40
codegen_flags: <defaults>
</compile_context>

<pallas_src>
import functools

import jax
import jax.numpy as jnp
from jax.experimental import pallas as pl
from jax.experimental.pallas import tpu as pltpu


def _round_up(a: int, b: int) -> int:
    return ((a + b - 1) // b) * b


def _residual_linear_kernel(x_ref, w_ref, b_ref, xres_ref, o_ref, acc_ref, *, mxu_dtype):
    """One (i, j, k) grid step of  o = x @ W + b + x.

    acc_ref is an f32 VMEM accumulator resident across the K axis (grid axis 2).
    Bias and residual adds are done in f32 on the last K step only.
    """
    k = pl.program_id(2)

    @pl.when(k == 0)
    def _():
        acc_ref[...] = jnp.zeros_like(acc_ref)

    acc_ref[...] += jnp.dot(
        x_ref[...].astype(mxu_dtype),
        w_ref[...].astype(mxu_dtype),
        preferred_element_type=jnp.float32,
    )

    @pl.when(k == pl.num_programs(2) - 1)
    def _():
        o_ref[...] = (
            acc_ref[...]
            + b_ref[...].astype(jnp.float32)
            + xres_ref[...].astype(jnp.float32)
        ).astype(o_ref.dtype)


def residual_linear(x, w, b, *, tm=256, tn=512, tk=512, use_bf16_matmul=True):
    """Residual(Linear)(x) = x @ W + b + x.

    x: (B, S, H) ; w: (H, H) stored [in, out] ; b: (1, H).
    Rows tiled by `tm`, output-hidden by `tn`, reduction-hidden by `tk`.
    Inputs are zero-padded (only when needed) so every block is (8,128)-aligned
    and the output stores are lane-dense.
    """
    B, S, H = x.shape
    M = B * S
    itemsize = jnp.dtype(x.dtype).itemsize

    # Effective tile sizes (never larger than the padded problem).
    tm_eff = min(tm, _round_up(M, 8))
    tn_eff = min(tn, _round_up(H, 128))
    tk_eff = min(tk, _round_up(H, 128))
    M_pad = _round_up(M, tm_eff)
    # H is padded to a common multiple of the N and K tiles (both are multiples
    # of 128, and for square Linear we use one padded H for both roles).
    h_tile_lcm = (tn_eff * tk_eff) // __import__("math").gcd(tn_eff, tk_eff)
    H_pad = _round_up(H, h_tile_lcm)

    x2 = x.reshape(M, H)
    if (M_pad, H_pad) != (M, H):
        x2 = jnp.pad(x2, ((0, M_pad - M), (0, H_pad - H)))
    wp = jnp.pad(w, ((0, H_pad - H), (0, H_pad - H))) if H_pad != H else w
    bp = jnp.pad(b, ((0, 0), (0, H_pad - H))) if H_pad != H else b

    grid = (M_pad // tm_eff, H_pad // tn_eff, H_pad // tk_eff)  # (i, j, k)

    # VMEM budget: double-buffered input tiles (x LHS, W, bias, residual x)
    # + double-buffered output tile + f32 accumulator, plus headroom; capped
    # well under v7x's 64 MiB physical VMEM.
    tile_bytes = (
        2 * (tm_eff * tk_eff + tk_eff * tn_eff + tn_eff + tm_eff * tn_eff) * itemsize
        + 2 * tm_eff * tn_eff * itemsize
        + tm_eff * tn_eff * 4
    )
    vmem_limit = int(min(max(tile_bytes + (4 << 20), 16 << 20), 56 << 20))

    cost = pl.CostEstimate(
        flops=2 * M_pad * H_pad * H_pad,
        transcendentals=0,
        bytes_accessed=itemsize * (3 * M_pad * H_pad + H_pad * H_pad + H_pad),
    )

    kernel = functools.partial(
        _residual_linear_kernel,
        mxu_dtype=jnp.bfloat16 if use_bf16_matmul else x.dtype,
    )

    out2 = pl.pallas_call(
        kernel,
        out_shape=jax.ShapeDtypeStruct((M_pad, H_pad), x.dtype),
        grid_spec=pltpu.PrefetchScalarGridSpec(
            num_scalar_prefetch=0,
            grid=grid,
            in_specs=[
                pl.BlockSpec((tm_eff, tk_eff), lambda i, j, k: (i, k)),  # x (matmul LHS)
                pl.BlockSpec((tk_eff, tn_eff), lambda i, j, k: (k, j)),  # W tile
                pl.BlockSpec((1, tn_eff), lambda i, j, k: (0, j)),       # bias row
                pl.BlockSpec((tm_eff, tn_eff), lambda i, j, k: (i, j)),  # x (residual)
            ],
            out_specs=pl.BlockSpec((tm_eff, tn_eff), lambda i, j, k: (i, j)),
            scratch_shapes=[pltpu.VMEM((tm_eff, tn_eff), jnp.float32)],
        ),
        compiler_params=pltpu.CompilerParams(
            dimension_semantics=("parallel", "parallel", "arbitrary"),
            vmem_limit_bytes=vmem_limit,
        ),
        cost_estimate=cost,
    )(x2, wp, bp, x2)

    return out2[:M, :H].reshape(B, S, H)


if __name__ == "__main__":
    B, S, H = 2, 8, 32
    key = jax.random.PRNGKey(0)
    kx, kw, kb = jax.random.split(key, 3)

    x = jax.random.normal(kx, (B, S, H), dtype=jnp.float32)
    # Deterministic synthetic parameters (no checkpoint load).
    w = jax.random.normal(kw, (H, H), dtype=jnp.float32) * 0.02  # [in, out]
    b = jax.random.normal(kb, (1, H), dtype=jnp.float32) * 0.01

    x2 = x.reshape(B * S, H)

    # 1) Exact f32 path check of Residual semantics: fn(x) + x.
    out_f32 = residual_linear(x, w, b, use_bf16_matmul=False)
    jax.block_until_ready(out_f32)
    ref_f32 = (jnp.dot(x2, w, preferred_element_type=jnp.float32) + b[0] + x2).reshape(B, S, H)
    assert jnp.allclose(out_f32, ref_f32, atol=1e-5, rtol=1e-5), "f32 mismatch vs reference"

    # 2) bf16-MXU path (perf default) checked against a matching bf16-input reference.
    out_bf16 = residual_linear(x, w, b, use_bf16_matmul=True)
    jax.block_until_ready(out_bf16)
    ref_bf16 = (
        jnp.dot(
            x2.astype(jnp.bfloat16), w.astype(jnp.bfloat16),
            preferred_element_type=jnp.float32,
        )
        + b[0]
        + x2
    ).reshape(B, S, H)
    assert jnp.allclose(out_bf16, ref_bf16, atol=1e-3, rtol=1e-3), "bf16 mismatch vs reference"

    print("KERNEL_OK")
</pallas_src>

<mosaic_0001>
module attributes {stable_mosaic.version = 11 : i64} {
  func.func @_residual_linear_kernel(%arg0: i32, %arg1: i32, %arg2: i32, %arg3: memref<16x128xf32, #tpu.memory_space<vmem>>, %arg4: memref<128x128xf32, #tpu.memory_space<vmem>>, %arg5: memref<1x128xf32, #tpu.memory_space<vmem>>, %arg6: memref<16x128xf32, #tpu.memory_space<vmem>>, %arg7: memref<16x128xf32, #tpu.memory_space<vmem>>, %arg8: memref<16x128xf32, #tpu.memory_space<vmem>>) attributes {dimension_semantics = [#tpu.dimension_semantics<parallel>, #tpu.dimension_semantics<parallel>, #tpu.dimension_semantics<arbitrary>], iteration_bounds = array<i64: 1, 1, 1>, scalar_prefetch = 0 : i64, scratch_operands = 1 : i64, tpu.core_type = #tpu.core_type<tc>, window_params = [{transform_indices = @transform_0, window_bounds = array<i64: 16, 128>}, {transform_indices = @transform_1, window_bounds = array<i64: 128, 128>}, {transform_indices = @transform_2, window_bounds = array<i64: 1, 128>}, {transform_indices = @transform_3, window_bounds = array<i64: 16, 128>}, {transform_indices = @transform_4, window_bounds = array<i64: 16, 128>}]} {
    %c0_i32 = arith.constant 0 : i32
    %0 = arith.cmpi eq, %arg2, %c0_i32 : i32
    %1 = arith.extui %0 : i1 to i32
    %c0_i32_0 = arith.constant 0 : i32
    %2 = arith.cmpi ne, %1, %c0_i32_0 : i32
    scf.if %2 {
      %cst_10 = arith.constant 0.000000e+00 : f32
      %12 = vector.broadcast %cst_10 : f32 to vector<16x128xf32>
      %c0_11 = arith.constant 0 : index
      %c0_12 = arith.constant 0 : index
      %13 = vector.load %arg8[%c0_11, %c0_12] : memref<16x128xf32, #tpu.memory_space<vmem>>, vector<16x128xf32>
      tpu.vector_store %arg8[%c0_11, %c0_12], %12 {strides = array<i32>} : memref<16x128xf32, #tpu.memory_space<vmem>>, vector<16x128xf32>,
    } else {
    }
    %c0 = arith.constant 0 : index
    %c0_1 = arith.constant 0 : index
    %3 = vector.load %arg8[%c0, %c0_1] : memref<16x128xf32, #tpu.memory_space<vmem>>, vector<16x128xf32>
    %c0_2 = arith.constant 0 : index
    %c0_3 = arith.constant 0 : index
    %4 = vector.load %arg3[%c0_2, %c0_3] : memref<16x128xf32, #tpu.memory_space<vmem>>, vector<16x128xf32>
    %c0_4 = arith.constant 0 : index
    %c0_5 = arith.constant 0 : index
    %5 = vector.load %arg4[%c0_4, %c0_5] : memref<128x128xf32, #tpu.memory_space<vmem>>, vector<128x128xf32>
    %cst = arith.constant dense<0.000000e+00> : vector<16x128xf32>
    %6 = tpu.matmul %4, %5, %cst {dimension_numbers = #tpu.dot_dimension_numbers<[1], [0], [0], [1], [0, 0, 1, 1], [], []>} : vector<16x128xf32>, vector<128x128xf32>, vector<16x128xf32> -> vector<16x128xf32>
    %7 = arith.addf %3, %6 : vector<16x128xf32>
    %c0_6 = arith.constant 0 : index
    %c0_7 = arith.constant 0 : index
    %8 = vector.load %arg8[%c0_6, %c0_7] : memref<16x128xf32, #tpu.memory_space<vmem>>, vector<16x128xf32>
    tpu.vector_store %arg8[%c0_6, %c0_7], %7 {strides = array<i32>} : memref<16x128xf32, #tpu.memory_space<vmem>>, vector<16x128xf32>,
    %c0_i32_8 = arith.constant 0 : i32
    %9 = arith.cmpi eq, %arg2, %c0_i32_8 : i32
    %10 = arith.extui %9 : i1 to i32
    %c0_i32_9 = arith.constant 0 : i32
    %11 = arith.cmpi ne, %10, %c0_i32_9 : i32
    scf.if %11 {
      %c0_10 = arith.constant 0 : index
      %c0_11 = arith.constant 0 : index
      %12 = vector.load %arg8[%c0_10, %c0_11] : memref<16x128xf32, #tpu.memory_space<vmem>>, vector<16x128xf32>
      %c0_12 = arith.constant 0 : index
      %c0_13 = arith.constant 0 : index
      %13 = vector.load %arg5[%c0_12, %c0_13] : memref<1x128xf32, #tpu.memory_space<vmem>>, vector<1x128xf32>
      %14 = vector.broadcast %13 : vector<1x128xf32> to vector<16x128xf32>
      %15 = arith.addf %12, %14 : vector<16x128xf32>
      %c0_14 = arith.constant 0 : index
      %c0_15 = arith.constant 0 : index
      %16 = vector.load %arg6[%c0_14, %c0_15] : memref<16x128xf32, #tpu.memory_space<vmem>>, vector<16x128xf32>
      %17 = arith.addf %15, %16 : vector<16x128xf32>
      %c0_16 = arith.constant 0 : index
      %c0_17 = arith.constant 0 : index
      %18 = vector.load %arg7[%c0_16, %c0_17] : memref<16x128xf32, #tpu.memory_space<vmem>>, vector<16x128xf32>
      tpu.vector_store %arg7[%c0_16, %c0_17], %17 {strides = array<i32>} : memref<16x128xf32, #tpu.memory_space<vmem>>, vector<16x128xf32>,
    } else {
    }
    return
  }
  func.func @transform_0(%arg0: i32, %arg1: i32, %arg2: i32) -> (i32, i32) {
    %c0_i32 = arith.constant 0 : i32
    return %arg0, %arg2 : i32, i32
  }
  func.func @transform_1(%arg0: i32, %arg1: i32, %arg2: i32) -> (i32, i32) {
    %c0_i32 = arith.constant 0 : i32
    return %arg2, %arg1 : i32, i32
  }
  func.func @transform_2(%arg0: i32, %arg1: i32, %arg2: i32) -> (i32, i32) {
    %c0_i32 = arith.constant 0 : i32
    %c0_i32_0 = arith.constant 0 : i32
    return %c0_i32, %arg1 : i32, i32
  }
  func.func @transform_3(%arg0: i32, %arg1: i32, %arg2: i32) -> (i32, i32) {
    %c0_i32 = arith.constant 0 : i32
    return %arg0, %arg1 : i32, i32
  }
  func.func @transform_4(%arg0: i32, %arg1: i32, %arg2: i32) -> (i32, i32) {
    %c0_i32 = arith.constant 0 : i32
    return %arg0, %arg1 : i32, i32
  }
}

</mosaic_0001>

<bundles_post_ra>
// kernel: tpu_custom_call.1
= control target key start
LH: loop header
LB: loop body
LE: loop exit
PB: predicated region body
PF: predicated region fallthrough
CT: control target
= control target key end

     0   :  { %9 = vsyncpa [#allocation4], 0  ;;  %s489_s0 = inlined_call_operand.hbm [shape: f32[16,128], index: 0, kind: input, shape index: {}]   ;;  %s490_s1 = inlined_call_operand.hbm [shape: f32[128,128], index: 1, kind: input, shape index: {}]   ;;  %s491_s2 = inlined_call_operand.vmem [shape: f32[1,128], index: 2, kind: input, shape index: {}]   ;;  %s492_s3 = inlined_call_operand.hbm [shape: f32[16,128], index: 3, kind: input, shape index: {}]   ;;  %s493_s4 = inlined_call_operand.hbm [shape: f32[16,128], index: 4, kind: output, shape index: {}]  }
   0x1   :  { %10 = vsyncpa [#allocation7], 0 }
   0x2   :  { %11 = vsyncpa [#allocation5], 0  ;;  %s388_s15 = smov [#allocation6]   ;;  %s389_s17 = smov [#allocation3]  }
   0x3   :  { %s29_s16 = sshll.u32 %s388_s15, 4  ;;  %s17_s18 = sshll.u32 %s389_s17, 4  ;;  %s30_s16 = int_to_ptr.vmem [resolvable:$true] %s29_s16  ;;  %s419_s18 = int_to_ptr.vmem [resolvable:$true] %s17_s18 }
   0x4   :  { %s294_s21 = scalar_lea.hbm %s490_s1, 2048 }
   0x5   :  { %p295_p0 = scmp.ne.s32.totalorder %s490_s1, %s294_s21  ;;  %p298_p1 = scmp.lt.u32.totalorder %s294_s21, %s490_s1 }
   0x7   :  { %p300_p2 = pnand %p298_p1, %p295_p0 }
   0x9   :  { %303 = shalt.err (!%p300_p2)
}
   0xa   :  { %s304_s26 = scalar_lea.vmem %s30_s16, 2048  ;;  %p309_p4 = scmp.lt.s32.totalorder %s30_s16, %s30_s16 }
   0xb   :  { %p305_p3 = scmp.ne.s32.totalorder %s30_s16, %s304_s26  ;;  %p310_p5 = scmp.lt.s32.totalorder %s304_s26, %s304_s26 }
   0xd   :  { %p311_p6 = por %p310_p5, %p309_p4 }
   0xf   :  { %p312_p7 = pnand %p311_p6, %p305_p3 }
  0x11   :  { %315 = shalt.err (!%p312_p7)
}
  0x12   :  { %s390_s27 = smov 128   ;;  %s391_s28 = smov 8  }
  0x13   :  { %35 = dma.hbm_to_vmem [thread:$0]  %s490_s1, 2048, %s30_s16, [#allocation7], %s390_s27, %s390_s27, %s391_s28  }
  0x14   :  { %s316_s7 = scalar_lea.hbm %s489_s0, 256 }
  0x15   :  { %p317_p8 = scmp.ne.s32.totalorder %s489_s0, %s316_s7  ;;  %p320_p9 = scmp.lt.u32.totalorder %s316_s7, %s489_s0 }
  0x17   :  { %p322_p10 = pnand %p320_p9, %p317_p8 }
  0x19   :  { %325 = shalt.err (!%p322_p10)
}
  0x1a   :  { %s326_s12 = scalar_lea.vmem %s419_s18, 256  ;;  %p331_p12 = scmp.lt.s32.totalorder %s419_s18, %s419_s18 }
  0x1b   :  { %p327_p11 = scmp.ne.s32.totalorder %s419_s18, %s326_s12  ;;  %p332_p13 = scmp.lt.s32.totalorder %s326_s12, %s326_s12 }
  0x1d   :  { %p333_p0 = por %p332_p13, %p331_p12 }
  0x1f   :  { %p334_p1 = pnand %p333_p0, %p327_p11 }
  0x21   :  { %337 = shalt.err (!%p334_p1)
}
  0x22   :  { %23 = dma.hbm_to_vmem [thread:$0]  %s489_s0, 256, %s419_s18, [#allocation4], %s390_s27, %s390_s27, %s391_s28  }
  0x23   :  { %s392_s14 = smov [#allocation8]   ;;  %s338_s19 = scalar_lea.hbm %s492_s3, 256 }
  0x24   :  { %s43_s15 = sshll.u32 %s392_s14, 4  ;;  %p339_p2 = scmp.ne.s32.totalorder %s492_s3, %s338_s19  ;;  %s44_s15 = int_to_ptr.vmem [resolvable:$true] %s43_s15 }
  0x25   :  { %p342_p3 = scmp.lt.u32.totalorder %s338_s19, %s492_s3 }
  0x27   :  { %p344_p4 = pnand %p342_p3, %p339_p2 }
  0x29   :  { %347 = shalt.err (!%p344_p4)
}
  0x2a   :  { %s348_s24 = scalar_lea.vmem %s44_s15, 256  ;;  %p353_p6 = scmp.lt.s32.totalorder %s44_s15, %s44_s15 }
  0x2b   :  { %p349_p5 = scmp.ne.s32.totalorder %s44_s15, %s348_s24  ;;  %p354_p7 = scmp.lt.s32.totalorder %s348_s24, %s348_s24 }
  0x2d   :  { %p355_p8 = por %p354_p7, %p353_p6 }
  0x2f   :  { %p356_p9 = pnand %p355_p8, %p349_p5 }
  0x31   :  { %359 = shalt.err (!%p356_p9)
}
  0x32   :  { %49 = dma.hbm_to_vmem [thread:$0]  %s492_s3, 256, %s44_s15, [#allocation7], %s390_s27, %s390_s27, %s391_s28  }
  0x33   :  { %382 = dma.done.wait [#allocation4], 256  }
  0x34   :  { %383 = vsyncadd [#allocation4], 4294967040 }
  0x35   :  { %384 = dma.done.wait [#allocation7], 2304  }
  0x36   :  { %385 = vsyncadd [#allocation7], 4294964992  ;;  %v69_v0 = vld [vmem:[#allocation6] sm:$0xff]  ;;  %v70_v1 = vld [vmem:[#allocation6 + $0x8] sm:$0xff]  ;;  %s393_s26 = smov [#allocation9]  }
  0x37   :  { %v71_v2 = vld [vmem:[#allocation6 + $0x10] sm:$0xff]  ;;  %v256_v3 = vpack.c.bf16 %v70_v1, %v69_v0  ;;  %v72_v4 = vld [vmem:[#allocation6 + $0x18] sm:$0xff]  ;;  %v73_v6 = vld [vmem:[#allocation6 + $0x20] sm:$0xff]  ;;  %s189_s29 = sshll.u32 %s393_s26, 4  ;;  %s190_s29 = int_to_ptr.vmem [resolvable:$true] %s189_s29 }
  0x38   :  { %v260_v5 = vpack.c.bf16 %v72_v4, %v71_v2  ;;  %v74_v7 = vld [vmem:[#allocation6 + $0x28] sm:$0xff]  ;;  %v67_v9 = vld [vmem:[#allocation3] sm:$0xff]  ;;  %v76_v11 = vld [vmem:[#allocation6 + $0x38] sm:$0xff]  ;;  %s360_s30 = scalar_lea.vmem %s190_s29, 256  ;;  %p365_p11 = scmp.lt.s32.totalorder %s190_s29, %s190_s29 }
  0x39   :  { %257 = vmatprep.subr.bf16.mxu0 %v256_v3  ;;  %v264_v8 = vpack.c.bf16 %v74_v7, %v73_v6  ;;  %v75_v10 = vld [vmem:[#allocation6 + $0x30] sm:$0xff]  ;;  %253 = vmatprep.mubr.f32.mxu0 %v67_v9  ;;  %v77_v13 = vld [vmem:[#allocation6 + $0x40] sm:$0xff]  ;;  %v78_v14 = vld [vmem:[#allocation6 + $0x48] sm:$0xff]  ;;  %p361_p10 = scmp.ne.s32.totalorder %s190_s29, %s360_s30  ;;  %p366_p12 = scmp.lt.s32.totalorder %s360_s30, %s360_s30 }
  0x3a   :  { %259 = vmatpush3.bf16.msra.mxu0 %v256_v3  ;;  %v268_v12 = vpack.c.bf16 %v76_v11, %v75_v10  ;;  %v272_v15 = vpack.c.bf16 %v78_v14, %v77_v13  ;;  %v79_v16 = vld [vmem:[#allocation6 + $0x50] sm:$0xff]  ;;  %v80_v17 = vld [vmem:[#allocation6 + $0x58] sm:$0xff]  ;;  %v81_v19 = vld [vmem:[#allocation6 + $0x60] sm:$0xff] }
  0x3b   :  { %261 = vmatprep.subr.bf16.mxu0 %v260_v5  ;;  %v276_v18 = vpack.c.bf16 %v80_v17, %v79_v16  ;;  %v82_v20 = vld [vmem:[#allocation6 + $0x68] sm:$0xff]  ;;  %v83_v22 = vld [vmem:[#allocation6 + $0x70] sm:$0xff]  ;;  %v84_v23 = vld [vmem:[#allocation6 + $0x78] sm:$0xff]  ;;  %p367_p13 = por %p366_p12, %p365_p11 }
  0x3c   :  { %v280_v21 = vpack.c.bf16 %v82_v20, %v81_v19  ;;  %v284_v24 = vpack.c.bf16 %v84_v23, %v83_v22  ;;  %v68_v25 = vld [vmem:[#allocation3 + $0x8] sm:$0xff]  ;;  %v202_v26 = vld [vmem:[%s491_s2] ss:$0 sm:$0xff]  ;;  %v179_v28 = vld [vmem:[#allocation8 + $0x8] sm:$0xff] }
  0x3d   :  { %v178_v31 = vld [vmem:[#allocation8] sm:$0xff]  ;;  %p368_p0 = pnand %p367_p13, %p361_p10 }
  0x3e   :  { %263 = vmatpush3.bf16.msra.mxu0 %v260_v5 }
  0x3f   :  { %265 = vmatprep.subr.bf16.mxu0 %v264_v8 }
  0x42   :  { %267 = vmatpush3.bf16.msra.mxu0 %v264_v8 }
  0x43   :  { %269 = vmatprep.subr.bf16.mxu0 %v268_v12 }
  0x46   :  { %271 = vmatpush3.bf16.msra.mxu0 %v268_v12 }
  0x47   :  { %273 = vmatprep.subr.bf16.mxu0 %v272_v15 }
  0x4a   :  { %275 = vmatpush3.bf16.msra.mxu0 %v272_v15 }
  0x4b   :  { %277 = vmatprep.subr.bf16.mxu0 %v276_v18 }
  0x4e   :  { %279 = vmatpush3.bf16.msra.mxu0 %v276_v18 }
  0x4f   :  { %281 = vmatprep.subr.bf16.mxu0 %v280_v21 }
  0x52   :  { %283 = vmatpush3.bf16.msra.mxu0 %v280_v21 }
  0x53   :  { %285 = vmatprep.subr.bf16.mxu0 %v284_v24 }
  0x56   :  { %287 = vmatpush3.bf16.msra.mxu0 %v284_v24 }
  0x59   :  { %254 = vmatmul.mubr.f32.vlgmr.msra.gmra.mrb[0].mxu0 %v68_v25 }
 0x12c   :  { %v255_v27 = vpop.f32.mrb[0].mxu0 }
 0x12d   :  { %v177_v29 = vadd.f32 %v255_v27, %v202_v26  ;;  %v151_v30 = vpop.f32.mrb[1].mxu0 }
 0x12e   :  { %v176_v32 = vadd.f32 %v202_v26, %v151_v30 }
 0x12f   :  { %v181_v33 = vadd.f32 %v179_v28, %v177_v29 }
 0x130   :  { %v180_v34 = vadd.f32 %v178_v31, %v176_v32 }
 0x131   :  { %183 = vst [vmem:[#allocation9 + $0x8] sm:$0xff] %v181_v33 }
 0x132   :  { %182 = vst [vmem:[#allocation9] sm:$0xff] %v180_v34 }
 0x133   :  { %371 = shalt.err (!%p368_p0)
}
 0x134   :  { %s372_s6 = scalar_lea.hbm %s493_s4, 256 }
 0x135   :  { %p373_p1 = scmp.ne.s32.totalorder %s493_s4, %s372_s6  ;;  %p376_p2 = scmp.lt.u32.totalorder %s372_s6, %s493_s4 }
 0x137   :  { %p378_p3 = pnand %p376_p2, %p373_p1 }
 0x139   :  { %381 = shalt.err (!%p378_p3)
}
 0x13a   :  { %195 = dma.vmem_to_hbm [thread:$0]  %s190_s29, 256, %s493_s4, [#allocation5], %s390_s27, %s390_s27, %s391_s28  }
 0x13b   :  { %386 = dma.done.wait [#allocation5], 256  }
 0x13c   :  { %387 = vsyncadd [#allocation5], 4294967040 }
 0x13d   :  { %199 = vsyncpa [#allocation4], 1 }
 0x13e   :  { %200 = vsyncpa [#allocation7], 1 }
 0x13f   :  { %201 = vsyncpa [#allocation5], 1 }

</bundles_post_ra>
